<compile_context>
chip_gen: v7x
topology: tpu7x:2x2x1
jax: 0.10.0
libtpu: 0.0.40
codegen_flags: <defaults>
</compile_context>

<pallas_src>
import functools

import jax
import jax.numpy as jnp
from jax.experimental import pallas as pl
from jax.experimental.pallas import tpu as pltpu


def _round_up(x, m):
    return ((x + m - 1) // m) * m


def _focal_loss_kernel(logits_ref, targets_ref, alpha_ref, out_ref, *, gamma):
    logits = logits_ref[...].astype(jnp.float32)      # (C_pad, TILE_N)
    targets = targets_ref[...]                        # (1, TILE_N) int32 (-1 = padding)
    alpha = alpha_ref[...].astype(jnp.float32)        # (C_pad, 1)

    c_pad, tile_n = logits.shape

    # One-hot selection mask: sublane iota of class ids vs lane-dense targets.
    # Padded batch lanes carry target = -1 and match nothing -> focal = 0.
    class_ids = jax.lax.broadcasted_iota(jnp.int32, (c_pad, tile_n), dimension=0)
    mask = class_ids == targets                       # (C_pad, TILE_N)

    # Numerically stable logsumexp; class reduction = 8-sublane reduce.
    # Padded class rows hold -1e30 so they vanish under exp().
    row_max = jnp.max(logits, axis=0, keepdims=True)                        # (1, TILE_N)
    e = jnp.exp(logits - row_max)                                           # (C_pad, TILE_N)
    sum_e = jnp.sum(e, axis=0, keepdims=True)                               # (1, TILE_N)

    tgt_logit = jnp.sum(jnp.where(mask, logits, 0.0), axis=0, keepdims=True)
    tgt_e = jnp.sum(jnp.where(mask, e, 0.0), axis=0, keepdims=True)
    alpha_t = jnp.sum(jnp.where(mask, alpha, 0.0), axis=0, keepdims=True)

    ce = row_max + jnp.log(sum_e) - tgt_logit                               # (1, TILE_N)
    # pt = exp(-ce) reuses the exponentials already computed (no extra exp pass).
    pt = tgt_e * pl.reciprocal(sum_e, approx=True)

    # (1 - pt)**gamma on the VPU for integer gamma; clamp guards pt > 1 rounding.
    one_minus_pt = jnp.maximum(1.0 - pt, 0.0)
    if isinstance(gamma, int):
        focal_w = jax.lax.integer_pow(one_minus_pt, gamma)
    elif float(gamma) == 0.0:
        focal_w = jnp.ones_like(one_minus_pt)
    else:
        focal_w = one_minus_pt ** jnp.float32(gamma)

    focal = alpha_t * focal_w * ce                                          # (1, TILE_N)

    # Per-tile partial sum; the tiny mean epilogue runs in the JAX wrapper.
    out_ref[...] = jnp.broadcast_to(jnp.sum(focal), out_ref.shape)


def focal_loss(logits, targets, alpha, gamma=2, tile_n=32768, class_major=False):
    """logits: (N, C) float (f32/bf16) -- or (C, N) if class_major=True;
    targets: (N,) int; alpha: (C,) float."""
    if class_major:
        c, n = logits.shape
        logits_cn = logits
    else:
        n, c = logits.shape
        logits_cn = jnp.transpose(logits)             # (C, N)

    c_pad = max(8, _round_up(c, 8))

    # Tile sizing: multiple of 128 lanes, capped by the (padded) batch, and
    # capped so large batches keep >= 4 grid steps (both v7x TensorCores busy).
    tile_n = _round_up(max(int(tile_n), 128), 128)
    tile_n = min(tile_n, _round_up(n, 128))
    if n >= 4 * 1024:
        tile_n = min(tile_n, _round_up(-(-n // 4), 128))
    n_pad = _round_up(n, tile_n)
    num_tiles = n_pad // tile_n

    # Batch columns padded with 0.0 (finite, harmless: their target is -1 so
    # they contribute exactly 0); class rows padded with -1e30 (vanish in lse).
    logits_cn = jnp.pad(logits_cn, ((0, 0), (0, n_pad - n)))
    logits_cn = jnp.pad(logits_cn, ((0, c_pad - c), (0, 0)),
                        constant_values=-1e30)                      # (C_pad, N_pad)
    targets_row = jnp.pad(targets.astype(jnp.int32).reshape(1, n),
                          ((0, 0), (0, n_pad - n)),
                          constant_values=-1)                       # (1, N_pad)
    alpha_col = jnp.pad(alpha.astype(jnp.float32).reshape(c, 1),
                        ((0, c_pad - c), (0, 0)))                   # (C_pad, 1)

    kernel = functools.partial(_focal_loss_kernel, gamma=gamma)

    partials = pl.pallas_call(
        kernel,
        out_shape=jax.ShapeDtypeStruct((num_tiles, 8, 128), jnp.float32),
        grid=(num_tiles,),
        in_specs=[
            pl.BlockSpec((c_pad, tile_n), lambda i: (0, i)),
            pl.BlockSpec((1, tile_n), lambda i: (0, i)),
            pl.BlockSpec((c_pad, 1), lambda i: (0, 0)),
        ],
        out_specs=pl.BlockSpec((1, 8, 128), lambda i: (i, 0, 0)),
        compiler_params=pltpu.CompilerParams(
            dimension_semantics=("parallel",),
            vmem_limit_bytes=32 * 1024 * 1024,
        ),
    )(logits_cn, targets_row, alpha_col)

    # Tiny epilogue: sum per-tile partials and take the mean over the true N.
    return jnp.sum(partials[:, 0, 0]) / jnp.float32(n)


def focal_loss_ref(logits, targets, alpha, gamma=2):
    """Pure-JAX reference mirroring the PyTorch forward."""
    logits = logits.astype(jnp.float32)
    logz = jax.nn.logsumexp(logits, axis=-1)
    ce = logz - jnp.take_along_axis(logits, targets[:, None], axis=-1)[:, 0]
    pt = jnp.exp(-ce)
    return jnp.mean(alpha[targets] * (1.0 - pt) ** gamma * ce)


if __name__ == "__main__":
    key = jax.random.PRNGKey(0)
    k1, k2, k3, k4, k5, k6 = jax.random.split(key, 6)

    num_classes = 7      # MELD has 7 emotion classes
    alpha = jnp.linspace(0.5, 1.5, num_classes, dtype=jnp.float32)

    # Tolerances are loosened slightly vs exact math because pt uses the
    # hardware approximate reciprocal (per the performance review).

    # Case 1: small batch (single tile).
    n1 = 8
    logits1 = jax.random.normal(k1, (n1, num_classes), dtype=jnp.float32)
    targets1 = jax.random.randint(k2, (n1,), 0, num_classes, dtype=jnp.int32)
    out1 = jax.block_until_ready(focal_loss(logits1, targets1, alpha, gamma=2))
    ref1 = focal_loss_ref(logits1, targets1, alpha, gamma=2)
    assert jnp.allclose(out1, ref1, rtol=2e-3, atol=1e-5), (out1, ref1)

    # Case 2: multi-tile grid + batch-padding lanes (parallel partial sums).
    n2 = 200
    logits2 = jax.random.normal(k3, (n2, num_classes), dtype=jnp.float32)
    targets2 = jax.random.randint(k4, (n2,), 0, num_classes, dtype=jnp.int32)
    out2 = jax.block_until_ready(
        focal_loss(logits2, targets2, alpha, gamma=2, tile_n=128))
    ref2 = focal_loss_ref(logits2, targets2, alpha, gamma=2)
    assert jnp.allclose(out2, ref2, rtol=2e-3, atol=1e-5), (out2, ref2)

    # Case 3: class-major fast path (no wrapper-side transpose pass).
    out3 = jax.block_until_ready(
        focal_loss(jnp.transpose(logits2), targets2, alpha, gamma=2,
                   tile_n=128, class_major=True))
    assert jnp.allclose(out3, ref2, rtol=2e-3, atol=1e-5), (out3, ref2)

    # Case 4: bf16 logits (halved HBM traffic), default (large) tile.
    n4 = 300
    logits4 = jax.random.normal(k5, (n4, num_classes), dtype=jnp.bfloat16)
    targets4 = jax.random.randint(k6, (n4,), 0, num_classes, dtype=jnp.int32)
    out4 = jax.block_until_ready(focal_loss(logits4, targets4, alpha, gamma=2))
    ref4 = focal_loss_ref(logits4, targets4, alpha, gamma=2)
    assert jnp.allclose(out4, ref4, rtol=2e-2, atol=1e-4), (out4, ref4)

    print("KERNEL_OK")
</pallas_src>

<mosaic_0001>
module attributes {stable_mosaic.version = 11 : i64} {
  func.func @_focal_loss_kernel(%arg0: i32, %arg1: memref<8x128xf32, #tpu.memory_space<vmem>>, %arg2: memref<1x128xi32, #tpu.memory_space<vmem>>, %arg3: memref<8x1xf32, #tpu.memory_space<vmem>>, %arg4: memref<1x8x128xf32, #tpu.memory_space<vmem>>) attributes {dimension_semantics = [#tpu.dimension_semantics<parallel>], iteration_bounds = array<i64: 1>, scalar_prefetch = 0 : i64, scratch_operands = 0 : i64, tpu.core_type = #tpu.core_type<tc>, window_params = [{transform_indices = @transform_0, window_bounds = array<i64: 8, 128>}, {transform_indices = @transform_1, window_bounds = array<i64: 1, 128>}, {pipeline_mode = #tpu.pipeline_mode<synchronous>, transform_indices = @transform_2, window_bounds = array<i64: 8, 1>}, {transform_indices = @transform_3, window_bounds = array<i64: 1, 8, 128>}]} {
    %c0 = arith.constant 0 : index
    %c0_0 = arith.constant 0 : index
    %0 = vector.load %arg1[%c0, %c0_0] : memref<8x128xf32, #tpu.memory_space<vmem>>, vector<8x128xf32>
    %c0_1 = arith.constant 0 : index
    %c0_2 = arith.constant 0 : index
    %1 = vector.load %arg2[%c0_1, %c0_2] : memref<1x128xi32, #tpu.memory_space<vmem>>, vector<1x128xi32>
    %c0_3 = arith.constant 0 : index
    %c0_4 = arith.constant 0 : index
    %2 = vector.load %arg3[%c0_3, %c0_4] : memref<8x1xf32, #tpu.memory_space<vmem>>, vector<8x1xf32>
    %3 = tpu.iota {dimensions = array<i32: 0>} : vector<8x128xi32>
    %4 = vector.broadcast %1 : vector<1x128xi32> to vector<8x128xi32>
    %5 = arith.cmpi eq, %3, %4 : vector<8x128xi32>
    %cst = arith.constant dense<0xFF800000> : vector<128xf32>
    %6 = vector.multi_reduction <maximumf>, %0, %cst [0] : vector<8x128xf32> to vector<128xf32>
    %7 = vector.shape_cast %6 : vector<128xf32> to vector<1x128xf32>
    %8 = vector.broadcast %7 : vector<1x128xf32> to vector<8x128xf32>
    %9 = arith.subf %0, %8 : vector<8x128xf32>
    %10 = math.exp %9 : vector<8x128xf32>
    %cst_5 = arith.constant dense<0.000000e+00> : vector<128xf32>
    %11 = vector.multi_reduction <add>, %10, %cst_5 [0] : vector<8x128xf32> to vector<128xf32>
    %12 = vector.shape_cast %11 : vector<128xf32> to vector<1x128xf32>
    %cst_6 = arith.constant 0.000000e+00 : f32
    %13 = vector.broadcast %cst_6 : f32 to vector<8x128xf32>
    %14 = arith.select %5, %0, %13 : vector<8x128xi1>, vector<8x128xf32>
    %cst_7 = arith.constant dense<0.000000e+00> : vector<128xf32>
    %15 = vector.multi_reduction <add>, %14, %cst_7 [0] : vector<8x128xf32> to vector<128xf32>
    %16 = vector.shape_cast %15 : vector<128xf32> to vector<1x128xf32>
    %cst_8 = arith.constant 0.000000e+00 : f32
    %17 = vector.broadcast %cst_8 : f32 to vector<8x128xf32>
    %18 = arith.select %5, %10, %17 : vector<8x128xi1>, vector<8x128xf32>
    %cst_9 = arith.constant dense<0.000000e+00> : vector<128xf32>
    %19 = vector.multi_reduction <add>, %18, %cst_9 [0] : vector<8x128xf32> to vector<128xf32>
    %20 = vector.shape_cast %19 : vector<128xf32> to vector<1x128xf32>
    %cst_10 = arith.constant 0.000000e+00 : f32
    %21 = vector.shape_cast %2 : vector<8x1xf32> to vector<8x1xf32>
    %22 = vector.broadcast %21 : vector<8x1xf32> to vector<8x128xf32>
    %23 = vector.broadcast %cst_10 : f32 to vector<8x128xf32>
    %24 = arith.select %5, %22, %23 : vector<8x128xi1>, vector<8x128xf32>
    %cst_11 = arith.constant dense<0.000000e+00> : vector<128xf32>
    %25 = vector.multi_reduction <add>, %24, %cst_11 [0] : vector<8x128xf32> to vector<128xf32>
    %26 = vector.shape_cast %25 : vector<128xf32> to vector<1x128xf32>
    %27 = math.log %12 : vector<1x128xf32>
    %28 = arith.addf %7, %27 : vector<1x128xf32>
    %29 = arith.subf %28, %16 : vector<1x128xf32>
    %30 = tpu.reciprocal %12 {approx = true} : vector<1x128xf32> -> vector<1x128xf32>
    %31 = arith.mulf %20, %30 : vector<1x128xf32>
    %cst_12 = arith.constant 1.000000e+00 : f32
    %32 = vector.broadcast %cst_12 : f32 to vector<1x128xf32>
    %33 = arith.subf %32, %31 : vector<1x128xf32>
    %cst_13 = arith.constant 0.000000e+00 : f32
    %34 = vector.broadcast %cst_13 : f32 to vector<1x128xf32>
    %35 = arith.maximumf %33, %34 : vector<1x128xf32>
    %36 = arith.mulf %35, %35 : vector<1x128xf32>
    %37 = arith.mulf %26, %36 : vector<1x128xf32>
    %38 = arith.mulf %37, %29 : vector<1x128xf32>
    %39 = vector.shape_cast %38 : vector<1x128xf32> to vector<1x1x128xf32>
    %cst_14 = arith.constant dense<0.000000e+00> : vector<1xf32>
    %40 = vector.multi_reduction <add>, %39, %cst_14 [1, 2] : vector<1x1x128xf32> to vector<1xf32>
    %41 = vector.shape_cast %40 : vector<1xf32> to vector<1x1x1xf32>
    %42 = vector.extract %41[0, 0, 0] : f32 from vector<1x1x1xf32>
    %43 = vector.broadcast %42 : f32 to vector<1x8x128xf32>
    %c0_15 = arith.constant 0 : index
    %c0_16 = arith.constant 0 : index
    %c0_17 = arith.constant 0 : index
    %44 = vector.load %arg4[%c0_15, %c0_16, %c0_17] : memref<1x8x128xf32, #tpu.memory_space<vmem>>, vector<1x8x128xf32>
    tpu.vector_store %arg4[%c0_15, %c0_16, %c0_17], %43 {strides = array<i32>} : memref<1x8x128xf32, #tpu.memory_space<vmem>>, vector<1x8x128xf32>,
    return
  }
  func.func @transform_0(%arg0: i32) -> (i32, i32) {
    %c0_i32 = arith.constant 0 : i32
    %c0_i32_0 = arith.constant 0 : i32
    return %c0_i32, %arg0 : i32, i32
  }
  func.func @transform_1(%arg0: i32) -> (i32, i32) {
    %c0_i32 = arith.constant 0 : i32
    %c0_i32_0 = arith.constant 0 : i32
    return %c0_i32, %arg0 : i32, i32
  }
  func.func @transform_2(%arg0: i32) -> (i32, i32) {
    %c0_i32 = arith.constant 0 : i32
    %c0_i32_0 = arith.constant 0 : i32
    %c0_i32_1 = arith.constant 0 : i32
    return %c0_i32, %c0_i32_0 : i32, i32
  }
  func.func @transform_3(%arg0: i32) -> (i32, i32, i32) {
    %c0_i32 = arith.constant 0 : i32
    %c0_i32_0 = arith.constant 0 : i32
    %c0_i32_1 = arith.constant 0 : i32
    return %arg0, %c0_i32, %c0_i32_0 : i32, i32, i32
  }
}

</mosaic_0001>

<bundles_post_ra>
// kernel: tpu_custom_call.1
= control target key start
LH: loop header
LB: loop body
LE: loop exit
PB: predicated region body
PF: predicated region fallthrough
CT: control target
= control target key end

     0   :  { %v140_v1 = vmov 0   ;;  %s186_s0 = inlined_call_operand.vmem [shape: f32[8,128], index: 0, kind: input, shape index: {}]   ;;  %s187_s1 = inlined_call_operand.vmem [shape: s32[1,128], index: 1, kind: input, shape index: {}]   ;;  %s188_s2 = inlined_call_operand.vmem [shape: f32[8,1], index: 2, kind: input, shape index: {}]   ;;  %s189_s3 = inlined_call_operand.hbm [shape: f32[1,8,128], index: 3, kind: output, shape index: {}]  }
   0x1   :  { %v17_v0 = vld [vmem:[%s188_s2] sm:$0xff]  ;;  %109 = vset.pattern.permute.xlu0 %v140_v1 }
   0x2   :  { %8 = vsyncpa [#allocation3], 0  ;;  %56 = vperm.xlu0 %109, %v17_v0   ;;  %v15_v2 = vld [vmem:[%s186_s0] sm:$0xff]  ;;  %v18_v12 = vlaneseq  ;;  %vm77_vm1 = vcmask 1040384   ;;  %s141_s0 = smov [#allocation2]  }
   0x3   :  { %v25_v3 = vrot.slane %v15_v2, 4  ;;  %v104_v15 = vld [vmem:[%s187_s1] ss:$0 sm:$0xff]  ;;  %s96_s1 = sshll.u32 %s141_s0, 4  ;;  %s97_s1 = int_to_ptr.vmem [resolvable:$true] %s96_s1 }
   0x4   :  { %v19_v14 = vshrl.u32 %v18_v12, 7  ;;  %s116_s18 = scalar_lea.vmem %s97_s1, 128  ;;  %p121_p1 = scmp.lt.s32.totalorder %s97_s1, %s97_s1 }
   0x5   :  { %v26_v4 = vmax.f32 %v15_v2, %v25_v3  ;;  %p117_p0 = scmp.ne.s32.totalorder %s97_s1, %s116_s18  ;;  %p122_p2 = scmp.lt.s32.totalorder %s116_s18, %s116_s18 }
   0x6   :  { %vm24_vm0 = vcmp.eq.s32.totalorder %v19_v14, %v104_v15 }
   0x7   :  { %v27_v5 = vrot.slane %v26_v4, 2  ;;  %v40_v25 = vsel %vm24_vm0, %v15_v2, 0.0  ;;  %p123_p3 = por %p122_p2, %p121_p1 }
   0x8   :  { %v41_v27 = vrot.slane %v40_v25, 4 }
   0x9   :  { %v28_v6 = vmax.f32 %v26_v4, %v27_v5  ;;  %p124_p4 = pnand %p123_p3, %p117_p0 }
   0xa   :  { %v42_v29 = vadd.f32 %v41_v27, %v40_v25 }
   0xb   :  { %v29_v7 = vrot.slane %v28_v6, 1 }
   0xc   :  { %v43_v32 = vrot.slane %v42_v29, 2 }
   0xd   :  { %v30_v8 = vmax.f32 %v28_v6, %v29_v7 }
   0xe   :  { %v44_v35 = vadd.f32 %v43_v32, %v42_v29 }
   0xf   :  { %v31_v9 = vsub.f32 %v15_v2, %v30_v8 }
  0x10   :  { %v45_v41 = vrot.slane %v44_v35, 1 }
  0x11   :  { %v32_v10 = vmul.f32 1.442695, %v31_v9 }
  0x12   :  { %v46_v46 = vadd.f32 %v45_v41, %v44_v35 }
  0x13   :  { %110 = vpow2.f32 %v32_v10 }
  0x1d   :  { %v111_v11 = vpop.eup %110 }
  0x1e   :  { %v34_v13 = vrot.slane %v111_v11, 4  ;;  %v47_v18 = vsel %vm24_vm0, %v111_v11, 0.0 }
  0x1f   :  { %v48_v20 = vrot.slane %v47_v18, 4 }
  0x20   :  { %v35_v16 = vadd.f32 %v111_v11, %v34_v13 }
  0x21   :  { %v49_v22 = vadd.f32 %v48_v20, %v47_v18 }
  0x22   :  { %v36_v17 = vrot.slane %v35_v16, 2 }
  0x23   :  { %v50_v24 = vrot.slane %v49_v22, 2 }
  0x24   :  { %v37_v19 = vadd.f32 %v36_v17, %v35_v16 }
  0x25   :  { %v51_v26 = vadd.f32 %v50_v24, %v49_v22 }
  0x26   :  { %v38_v21 = vrot.slane %v37_v19, 1 }
  0x27   :  { %v52_v28 = vrot.slane %v51_v26, 1 }
  0x28   :  { %v39_v23 = vadd.f32 %v38_v21, %v37_v19 }
  0x29   :  { %v53_v30 = vadd.f32 %v52_v28, %v51_v26 }
  0x2a   :  { %112 = vrcp.f32 %v39_v23 }
  0x2b   :  { %114 = vlog2.f32 %v39_v23 }
  0x34   :  { %v113_v31 = vpop.eup %112 }
  0x35   :  { %v71_v33 = vmul.f32 %v113_v31, %v53_v30  ;;  %v115_v36 = vpop.eup %114 }
  0x36   :  { %v67_v42 = vmul.f32 0.6931472, %v115_v36 }
  0x37   :  { %v72_v39 = vsub.f32 1.0, %v71_v33 }
  0x38   :  { %v68_v47 = vadd.f32 %v67_v42, %v30_v8 }
  0x39   :  { %v73_v44 = vmax.f32 %v72_v39, 0.0 }
  0x3a   :  { %v69_v51 = vsub.f32 %v68_v47, %v46_v46 }
  0x3b   :  { %v74_v49 = vmul.f32 %v73_v44, %v73_v44 }
  0x81   :  { %v57_v34 = vpop.permute.xlu0 %56 }
  0x82   :  { %v59_v37 = vsel %vm24_vm0, %v57_v34, 0.0 }
  0x83   :  { %v60_v38 = vrot.slane %v59_v37, 4 }
  0x85   :  { %v61_v40 = vadd.f32 %v60_v38, %v59_v37 }
  0x87   :  { %v62_v43 = vrot.slane %v61_v40, 2 }
  0x89   :  { %v63_v45 = vadd.f32 %v62_v43, %v61_v40 }
  0x8b   :  { %v64_v48 = vrot.slane %v63_v45, 1 }
  0x8d   :  { %v65_v50 = vadd.f32 %v64_v48, %v63_v45 }
  0x8f   :  { %v75_v52 = vmul.f32 %v74_v49, %v65_v50 }
  0x91   :  { %v76_v53 = vmul.f32 %v75_v52, %v69_v51 }
  0x93   :  { %v78_v54 = vsel %vm77_vm1, %v76_v53, 0.0 }
  0x94   :  { %79 = vadd.xlane.f32.xlu0 %v78_v54 }
 0x121   :  { %v80_v55 = vpop.xlane.xlu0 %79 }
 0x122   :  { %v81_v56 = vrot.slane %v80_v55, 4 }
 0x124   :  { %v82_v57 = vadd.f32 %v81_v56, %v80_v55 }
 0x126   :  { %v83_v58 = vrot.slane %v82_v57, 2 }
 0x128   :  { %v84_v59 = vadd.f32 %v83_v58, %v82_v57 }
 0x12a   :  { %v85_v60 = vrot.slane %v84_v59, 1 }
 0x12c   :  { %v86_v61 = vadd.f32 %v85_v60, %v84_v59 }
 0x12e   :  { %105 = vpush %v86_v61 }
 0x15f   :  { %s106_s17 = spop %105 }
 0x160   :  { %v88_v62 = vstv %s106_s17 }
 0x161   :  { %89 = vst [vmem:[#allocation2] sm:$0xff] %v88_v62 }
 0x162   :  { %127 = shalt.err (!%p124_p4)
}
 0x163   :  { %s128_s21 = scalar_lea.hbm %s189_s3, 128 }
 0x164   :  { %p129_p5 = scmp.ne.s32.totalorder %s189_s3, %s128_s21  ;;  %p132_p6 = scmp.lt.u32.totalorder %s128_s21, %s189_s3 }
 0x166   :  { %p134_p7 = pnand %p132_p6, %p129_p5 }
 0x168   :  { %137 = shalt.err (!%p134_p7)
}
 0x169   :  { %99 = dma.vmem_to_hbm [thread:$0]  %s97_s1, 128, %s189_s3, [#allocation3]  }
 0x16a   :  { %138 = dma.done.wait [#allocation3], 128  }
 0x16b   :  { %139 = vsyncadd [#allocation3], 4294967168 }
 0x16c   :  { %103 = vsyncpa [#allocation3], 1 }

</bundles_post_ra>
